<compile_context>
chip_gen: v5e
topology: v5e:2x2
jax: 0.10.0
libtpu: 0.0.40
codegen_flags: <defaults>
</compile_context>

<pallas_src>
import math

import jax
import jax.numpy as jnp
from jax.experimental import pallas as pl
from jax.experimental.pallas import tpu as pltpu

# ---------------- config (mirrors the cfg dict the PyTorch module expects) ---
CFG = dict(
    poseNet_freq=4,                # input_t_dim = 2*4 + 1 = 9
    layers_feat=[32, 32, 32, 32],  # -> 3 Linear layers
    skip=[1],                      # layer 1 gets the encoding concatenated
    activ="relu",
)

LF = CFG["poseNet_freq"]   # 4 frequencies
IN_T = 2 * LF + 1          # 9 encoding features
ENC_K = 16                 # padded feature rows (sublane dim) of the encoding
HID = 32                   # hidden width
OUTW = 4                   # quaternion
ROW_TILE = 8192            # batch rows (lanes) per grid step; sweep 4096..16384


def _round_up(x, m):
    return ((x + m - 1) // m) * m


# ---------------- parameter construction (deterministic, synthetic) ----------
def init_params(key, cfg, out_dim=4):
    """List of (W (in,out), b (out,)) matching the torch module's layer shapes."""
    in_t = cfg["poseNet_freq"] * 2 + 1
    feats = cfg["layers_feat"]
    L = list(zip(feats[:-1], feats[1:]))
    params = []
    for li, (k_in, k_out) in enumerate(L):
        if li == 0:
            k_in = in_t
        if li in cfg["skip"]:
            k_in += in_t
        if li == len(L) - 1:
            k_out = out_dim
        key, kw = jax.random.split(key)
        if li == len(L) - 1:
            # torch.nn.init.uniform_(w, b=1e-6)
            W = jax.random.uniform(kw, (k_in, k_out), jnp.float32, 0.0, 1e-6)
        else:
            # xavier_uniform_
            limit = math.sqrt(6.0 / (k_in + k_out))
            W = jax.random.uniform(kw, (k_in, k_out), jnp.float32, -limit, limit)
        b = jnp.zeros((k_out,), jnp.float32)
        params.append((W, b))
    return params


def pack_params(params):
    """Pack the 3 Linear layers into transposed f32 slabs for the kernel.

    w_enc_t : (64, 16)  = [W0^T ; W1_enc^T]   (feature cols 0..8 valid)
    w_hid_t : (32, 32)  = W1_h^T              (hidden part of the skip layer)
    w_out_t : (8, 32)   = W2^T in rows 0..3
    bias    : (72, 1)   = [b0 ; b1 ; b2 padded]
    """
    (W0, b0), (W1, b1), (W2, b2) = params
    W1h, W1e = W1[:HID], W1[HID:]          # hidden part (32,32), enc part (9,32)

    w_enc_t = jnp.zeros((2 * HID, ENC_K), jnp.float32)
    w_enc_t = w_enc_t.at[0:HID, 0:IN_T].set(W0.T)
    w_enc_t = w_enc_t.at[HID:2 * HID, 0:IN_T].set(W1e.T)

    w_hid_t = W1h.T.astype(jnp.float32)
    w_out_t = jnp.zeros((8, HID), jnp.float32).at[0:OUTW, :].set(W2.T)

    bias = jnp.zeros((2 * HID + 8, 1), jnp.float32)
    bias = bias.at[0:HID, 0].set(b0)
    bias = bias.at[HID:2 * HID, 0].set(b1)
    bias = bias.at[2 * HID:2 * HID + OUTW, 0].set(b2)
    return w_enc_t, w_hid_t, w_out_t, bias


# ---------------- Pallas kernel ----------------------------------------------
def rotsnet_kernel(idx_ref, wenc_ref, whid_ref, wout_ref, b_ref, out_ref):
    f32 = jnp.float32
    rt = idx_ref.shape[1]                                 # rows of this tile (lanes)

    idx = idx_ref[...]                                    # (1, rt) f32
    # ---- positional encoding, built transposed: rows = features, lanes = batch
    # row 0: idx ; rows 1..LF: sin(idx*2^k*pi) ; rows LF+1..2LF: cos(...) ; rest 0
    row = jax.lax.broadcasted_iota(jnp.int32, (ENC_K, rt), 0)
    rowf = row.astype(f32)
    k = jnp.where(row <= LF, rowf - 1.0, rowf - (LF + 1.0))
    spec = idx * (jnp.exp2(k) * math.pi)                  # (ENC_K, rt)
    idx_b = jnp.broadcast_to(idx, spec.shape)
    enc_t = jnp.where(row == 0, idx_b,
            jnp.where(row <= LF, jnp.sin(spec),
            jnp.where(row <= 2 * LF, jnp.cos(spec), 0.0)))

    b = b_ref[...]                                        # (72, 1) f32

    # ---- layer 0 and the encoding half of the skip layer fused in ONE matmul
    t = jnp.dot(wenc_ref[...], enc_t, preferred_element_type=f32)     # (64, rt)
    h1 = jnp.maximum(t[0:HID] + b[0:HID], 0.0)                        # (32, rt)
    # ---- skip layer: concat([h1, enc]) @ W1  ==  W1h^T @ h1 + W1e^T @ enc
    h2 = jnp.maximum(jnp.dot(whid_ref[...], h1, preferred_element_type=f32)
                     + t[HID:2 * HID] + b[HID:2 * HID], 0.0)          # (32, rt)
    # ---- output layer -> quaternion pre-activation (rows 0..3 valid)
    q_pre = jnp.dot(wout_ref[...], h2, preferred_element_type=f32)    # (8, rt)
    q4 = q_pre[0:OUTW] + b[2 * HID:2 * HID + OUTW]                    # (4, rt)

    # quaternion activation: q0 = 1 - tanh, q1..3 = tanh
    th = jnp.tanh(q4)
    qrow = jax.lax.broadcasted_iota(jnp.int32, th.shape, 0)
    q = jnp.where(qrow == 0, 1.0 - th, th)

    # normalize: q / (||q|| + 1e-18)  (exact eps placement parity with torch)
    sumsq = (q[0:1] * q[0:1] + q[1:2] * q[1:2]
             + q[2:3] * q[2:3] + q[3:4] * q[3:4])                     # (1, rt)
    inv = 1.0 / (jnp.sqrt(sumsq) + 1e-18)

    out_ref[...] = (q * inv).astype(out_ref.dtype)        # (4, rt) lane-dense store


# ---------------- wrapper -----------------------------------------------------
def _choose_row_tile(n_rows):
    n = _round_up(max(n_rows, 1), 128)
    if n >= 2 * ROW_TILE:
        return ROW_TILE
    if n <= 256:
        return n                          # tiny batch: one grid step
    # medium batch: >= 2 grid steps so the "parallel" axis can shard across both
    # TensorCores on v7x (no effect on v5e/v6e single-TC chips).
    return _round_up(pl.cdiv(n, 2), 128)


def rotsnet_forward(index, w_enc_t, w_hid_t, w_out_t, bias):
    idx = jnp.asarray(index, jnp.float32).reshape(-1)
    N = idx.shape[0]
    row_tile = _choose_row_tile(N)
    Np = _round_up(N, row_tile)

    # Only the raw index goes to the kernel (4 B/row); the encoding is in-kernel.
    idx_pad = jnp.zeros((1, Np), jnp.float32).at[0, :N].set(idx)

    out = pl.pallas_call(
        rotsnet_kernel,
        out_shape=jax.ShapeDtypeStruct((OUTW, Np), jnp.float32),
        grid_spec=pltpu.PrefetchScalarGridSpec(
            num_scalar_prefetch=0,
            grid=(Np // row_tile,),
            in_specs=[
                pl.BlockSpec((1, row_tile), lambda i: (0, i)),        # raw indices
                pl.BlockSpec((2 * HID, ENC_K), lambda i: (0, 0)),     # [W0^T ; W1e^T]
                pl.BlockSpec((HID, HID), lambda i: (0, 0)),           # W1h^T
                pl.BlockSpec((8, HID), lambda i: (0, 0)),             # W2^T (padded)
                pl.BlockSpec((2 * HID + 8, 1), lambda i: (0, 0)),     # biases
            ],
            out_specs=pl.BlockSpec((OUTW, row_tile), lambda i: (0, i)),
        ),
        compiler_params=pltpu.CompilerParams(dimension_semantics=("parallel",)),
    )(idx_pad, w_enc_t, w_hid_t, w_out_t, bias)

    # padded rows (N..Np) carry garbage quaternions; slice them off, then
    # untranspose to the module's (N, 4) layout.
    return out[:, :N].T


forward_jit = jax.jit(rotsnet_forward)


# ---------------- pure-JAX reference (for verification) ----------------------
def positional_encoding(idx, Lf):
    freq = (2.0 ** jnp.arange(Lf, dtype=jnp.float32)) * math.pi
    spec = idx[..., None] * freq                            # (N, 1, Lf)
    enc = jnp.stack([jnp.sin(spec), jnp.cos(spec)], axis=-2)
    return enc.reshape(idx.shape[0], -1)                    # (N, 2*Lf) [sins..., coss...]


def reference_forward(index, params):
    idx = jnp.asarray(index, jnp.float32).reshape(-1, 1)
    enc = jnp.concatenate([idx, positional_encoding(idx, CFG["poseNet_freq"])], -1)
    h = enc
    for li, (W, b) in enumerate(params):
        if li in CFG["skip"]:
            h = jnp.concatenate([h, enc], -1)
        h = h @ W + b
        if li == len(params) - 1:
            h = jnp.concatenate([1.0 - jnp.tanh(h[:, 0:1]), jnp.tanh(h[:, 1:])], -1)
        else:
            h = jax.nn.relu(h)
    norm = jnp.linalg.norm(h, axis=-1, keepdims=True)
    return h / (norm + 1e-18)


# ---------------- main --------------------------------------------------------
if __name__ == "__main__":
    key = jax.random.PRNGKey(0)
    k_w, k_x = jax.random.split(key)

    params = init_params(k_w, CFG, out_dim=4)
    packed = pack_params(params)

    N = 16  # small batch of time/frame indices
    index = jax.random.uniform(k_x, (N,), jnp.float32, minval=0.0, maxval=10.0)

    quat = forward_jit(index, *packed)
    jax.block_until_ready(quat)

    ref = reference_forward(index, params)
    assert quat.shape == (N, 4), f"bad output shape {quat.shape}"
    assert bool(jnp.all(jnp.isfinite(quat))), "non-finite output"
    assert jnp.allclose(quat, ref, atol=1e-4, rtol=1e-4), "mismatch vs reference"

    print("KERNEL_OK")
</pallas_src>

<mosaic_0001>
module attributes {stable_mosaic.version = 11 : i64} {
  func.func @rotsnet_kernel(%arg0: i32, %arg1: memref<1x128xf32, #tpu.memory_space<vmem>>, %arg2: memref<64x16xf32, #tpu.memory_space<vmem>>, %arg3: memref<32x32xf32, #tpu.memory_space<vmem>>, %arg4: memref<8x32xf32, #tpu.memory_space<vmem>>, %arg5: memref<72x1xf32, #tpu.memory_space<vmem>>, %arg6: memref<4x128xf32, #tpu.memory_space<vmem>>) attributes {dimension_semantics = [#tpu.dimension_semantics<parallel>], iteration_bounds = array<i64: 1>, scalar_prefetch = 0 : i64, scratch_operands = 0 : i64, tpu.core_type = #tpu.core_type<tc>, window_params = [{transform_indices = @transform_0, window_bounds = array<i64: 1, 128>}, {pipeline_mode = #tpu.pipeline_mode<synchronous>, transform_indices = @transform_1, window_bounds = array<i64: 64, 16>}, {pipeline_mode = #tpu.pipeline_mode<synchronous>, transform_indices = @transform_2, window_bounds = array<i64: 32, 32>}, {pipeline_mode = #tpu.pipeline_mode<synchronous>, transform_indices = @transform_3, window_bounds = array<i64: 8, 32>}, {pipeline_mode = #tpu.pipeline_mode<synchronous>, transform_indices = @transform_4, window_bounds = array<i64: 72, 1>}, {transform_indices = @transform_5, window_bounds = array<i64: 4, 128>}]} {
    %c0 = arith.constant 0 : index
    %c0_0 = arith.constant 0 : index
    %0 = vector.load %arg1[%c0, %c0_0] : memref<1x128xf32, #tpu.memory_space<vmem>>, vector<1x128xf32>
    %1 = tpu.iota {dimensions = array<i32: 0>} : vector<16x128xi32>
    %2 = arith.sitofp %1 : vector<16x128xi32> to vector<16x128xf32>
    %c4_i32 = arith.constant 4 : i32
    %3 = vector.broadcast %c4_i32 : i32 to vector<16x128xi32>
    %4 = arith.cmpi sle, %1, %3 : vector<16x128xi32>
    %cst = arith.constant 1.000000e+00 : f32
    %5 = vector.broadcast %cst : f32 to vector<16x128xf32>
    %6 = arith.subf %2, %5 : vector<16x128xf32>
    %cst_1 = arith.constant 5.000000e+00 : f32
    %7 = vector.broadcast %cst_1 : f32 to vector<16x128xf32>
    %8 = arith.subf %2, %7 : vector<16x128xf32>
    %9 = arith.select %4, %6, %8 : vector<16x128xi1>, vector<16x128xf32>
    %10 = math.exp2 %9 : vector<16x128xf32>
    %cst_2 = arith.constant 3.14159274 : f32
    %11 = vector.broadcast %cst_2 : f32 to vector<16x128xf32>
    %12 = arith.mulf %10, %11 : vector<16x128xf32>
    %13 = vector.broadcast %0 : vector<1x128xf32> to vector<16x128xf32>
    %14 = arith.mulf %13, %12 : vector<16x128xf32>
    %15 = vector.shape_cast %0 : vector<1x128xf32> to vector<1x128xf32>
    %16 = vector.broadcast %15 : vector<1x128xf32> to vector<16x128xf32>
    %c0_i32 = arith.constant 0 : i32
    %17 = vector.broadcast %c0_i32 : i32 to vector<16x128xi32>
    %18 = arith.cmpi eq, %1, %17 : vector<16x128xi32>
    %c4_i32_3 = arith.constant 4 : i32
    %19 = vector.broadcast %c4_i32_3 : i32 to vector<16x128xi32>
    %20 = arith.cmpi sle, %1, %19 : vector<16x128xi32>
    %21 = math.sin %14 : vector<16x128xf32>
    %c8_i32 = arith.constant 8 : i32
    %22 = vector.broadcast %c8_i32 : i32 to vector<16x128xi32>
    %23 = arith.cmpi sle, %1, %22 : vector<16x128xi32>
    %24 = math.cos %14 : vector<16x128xf32>
    %cst_4 = arith.constant 0.000000e+00 : f32
    %25 = vector.broadcast %cst_4 : f32 to vector<16x128xf32>
    %26 = arith.select %23, %24, %25 : vector<16x128xi1>, vector<16x128xf32>
    %27 = arith.select %20, %21, %26 : vector<16x128xi1>, vector<16x128xf32>
    %28 = arith.select %18, %16, %27 : vector<16x128xi1>, vector<16x128xf32>
    %c0_5 = arith.constant 0 : index
    %c0_6 = arith.constant 0 : index
    %29 = vector.load %arg5[%c0_5, %c0_6] : memref<72x1xf32, #tpu.memory_space<vmem>>, vector<72x1xf32>
    %c0_7 = arith.constant 0 : index
    %c0_8 = arith.constant 0 : index
    %30 = vector.load %arg2[%c0_7, %c0_8] : memref<64x16xf32, #tpu.memory_space<vmem>>, vector<64x16xf32>
    %cst_9 = arith.constant dense<0.000000e+00> : vector<64x128xf32>
    %31 = tpu.matmul %30, %28, %cst_9 {dimension_numbers = #tpu.dot_dimension_numbers<[1], [0], [0], [1], [0, 0, 1, 1], [], []>} : vector<64x16xf32>, vector<16x128xf32>, vector<64x128xf32> -> vector<64x128xf32>
    %32 = vector.extract_strided_slice %31 {offsets = [0, 0], sizes = [32, 128], strides = [1, 1]} : vector<64x128xf32> to vector<32x128xf32>
    %33 = vector.extract_strided_slice %29 {offsets = [0, 0], sizes = [32, 1], strides = [1, 1]} : vector<72x1xf32> to vector<32x1xf32>
    %34 = vector.broadcast %33 : vector<32x1xf32> to vector<32x128xf32>
    %35 = arith.addf %32, %34 : vector<32x128xf32>
    %cst_10 = arith.constant 0.000000e+00 : f32
    %36 = vector.broadcast %cst_10 : f32 to vector<32x128xf32>
    %37 = arith.maximumf %35, %36 : vector<32x128xf32>
    %c0_11 = arith.constant 0 : index
    %c0_12 = arith.constant 0 : index
    %38 = vector.load %arg3[%c0_11, %c0_12] : memref<32x32xf32, #tpu.memory_space<vmem>>, vector<32x32xf32>
    %cst_13 = arith.constant dense<0.000000e+00> : vector<32x128xf32>
    %39 = tpu.matmul %38, %37, %cst_13 {dimension_numbers = #tpu.dot_dimension_numbers<[1], [0], [0], [1], [0, 0, 1, 1], [], []>} : vector<32x32xf32>, vector<32x128xf32>, vector<32x128xf32> -> vector<32x128xf32>
    %40 = vector.extract_strided_slice %31 {offsets = [32, 0], sizes = [32, 128], strides = [1, 1]} : vector<64x128xf32> to vector<32x128xf32>
    %41 = arith.addf %39, %40 : vector<32x128xf32>
    %42 = vector.extract_strided_slice %29 {offsets = [32, 0], sizes = [32, 1], strides = [1, 1]} : vector<72x1xf32> to vector<32x1xf32>
    %43 = vector.broadcast %42 : vector<32x1xf32> to vector<32x128xf32>
    %44 = arith.addf %41, %43 : vector<32x128xf32>
    %cst_14 = arith.constant 0.000000e+00 : f32
    %45 = vector.broadcast %cst_14 : f32 to vector<32x128xf32>
    %46 = arith.maximumf %44, %45 : vector<32x128xf32>
    %c0_15 = arith.constant 0 : index
    %c0_16 = arith.constant 0 : index
    %47 = vector.load %arg4[%c0_15, %c0_16] : memref<8x32xf32, #tpu.memory_space<vmem>>, vector<8x32xf32>
    %cst_17 = arith.constant dense<0.000000e+00> : vector<8x128xf32>
    %48 = tpu.matmul %47, %46, %cst_17 {dimension_numbers = #tpu.dot_dimension_numbers<[1], [0], [0], [1], [0, 0, 1, 1], [], []>} : vector<8x32xf32>, vector<32x128xf32>, vector<8x128xf32> -> vector<8x128xf32>
    %49 = vector.extract_strided_slice %48 {offsets = [0, 0], sizes = [4, 128], strides = [1, 1]} : vector<8x128xf32> to vector<4x128xf32>
    %50 = vector.extract_strided_slice %29 {offsets = [64, 0], sizes = [4, 1], strides = [1, 1]} : vector<72x1xf32> to vector<4x1xf32>
    %51 = vector.broadcast %50 : vector<4x1xf32> to vector<4x128xf32>
    %52 = arith.addf %49, %51 : vector<4x128xf32>
    %53 = math.tanh %52 : vector<4x128xf32>
    %54 = tpu.iota {dimensions = array<i32: 0>} : vector<4x128xi32>
    %c0_i32_18 = arith.constant 0 : i32
    %55 = vector.broadcast %c0_i32_18 : i32 to vector<4x128xi32>
    %56 = arith.cmpi eq, %54, %55 : vector<4x128xi32>
    %cst_19 = arith.constant 1.000000e+00 : f32
    %57 = vector.broadcast %cst_19 : f32 to vector<4x128xf32>
    %58 = arith.subf %57, %53 : vector<4x128xf32>
    %59 = arith.select %56, %58, %53 : vector<4x128xi1>, vector<4x128xf32>
    %60 = vector.extract_strided_slice %59 {offsets = [0, 0], sizes = [1, 128], strides = [1, 1]} : vector<4x128xf32> to vector<1x128xf32>
    %61 = vector.extract_strided_slice %59 {offsets = [0, 0], sizes = [1, 128], strides = [1, 1]} : vector<4x128xf32> to vector<1x128xf32>
    %62 = arith.mulf %60, %61 : vector<1x128xf32>
    %63 = vector.extract_strided_slice %59 {offsets = [1, 0], sizes = [1, 128], strides = [1, 1]} : vector<4x128xf32> to vector<1x128xf32>
    %64 = vector.extract_strided_slice %59 {offsets = [1, 0], sizes = [1, 128], strides = [1, 1]} : vector<4x128xf32> to vector<1x128xf32>
    %65 = arith.mulf %63, %64 : vector<1x128xf32>
    %66 = arith.addf %62, %65 : vector<1x128xf32>
    %67 = vector.extract_strided_slice %59 {offsets = [2, 0], sizes = [1, 128], strides = [1, 1]} : vector<4x128xf32> to vector<1x128xf32>
    %68 = vector.extract_strided_slice %59 {offsets = [2, 0], sizes = [1, 128], strides = [1, 1]} : vector<4x128xf32> to vector<1x128xf32>
    %69 = arith.mulf %67, %68 : vector<1x128xf32>
    %70 = arith.addf %66, %69 : vector<1x128xf32>
    %71 = vector.extract_strided_slice %59 {offsets = [3, 0], sizes = [1, 128], strides = [1, 1]} : vector<4x128xf32> to vector<1x128xf32>
    %72 = vector.extract_strided_slice %59 {offsets = [3, 0], sizes = [1, 128], strides = [1, 1]} : vector<4x128xf32> to vector<1x128xf32>
    %73 = arith.mulf %71, %72 : vector<1x128xf32>
    %74 = arith.addf %70, %73 : vector<1x128xf32>
    %75 = math.sqrt %74 : vector<1x128xf32>
    %cst_20 = arith.constant 1.000000e-18 : f32
    %76 = vector.broadcast %cst_20 : f32 to vector<1x128xf32>
    %77 = arith.addf %75, %76 : vector<1x128xf32>
    %cst_21 = arith.constant 1.000000e+00 : f32
    %78 = vector.broadcast %cst_21 : f32 to vector<1x128xf32>
    %79 = arith.divf %78, %77 : vector<1x128xf32>
    %80 = vector.broadcast %79 : vector<1x128xf32> to vector<4x128xf32>
    %81 = arith.mulf %59, %80 : vector<4x128xf32>
    %c0_22 = arith.constant 0 : index
    %c0_23 = arith.constant 0 : index
    %82 = vector.load %arg6[%c0_22, %c0_23] : memref<4x128xf32, #tpu.memory_space<vmem>>, vector<4x128xf32>
    tpu.vector_store %arg6[%c0_22, %c0_23], %81 {strides = array<i32>} : memref<4x128xf32, #tpu.memory_space<vmem>>, vector<4x128xf32>,
    return
  }
  func.func @transform_0(%arg0: i32) -> (i32, i32) {
    %c0_i32 = arith.constant 0 : i32
    %c0_i32_0 = arith.constant 0 : i32
    return %c0_i32, %arg0 : i32, i32
  }
  func.func @transform_1(%arg0: i32) -> (i32, i32) {
    %c0_i32 = arith.constant 0 : i32
    %c0_i32_0 = arith.constant 0 : i32
    %c0_i32_1 = arith.constant 0 : i32
    return %c0_i32, %c0_i32_0 : i32, i32
  }
  func.func @transform_2(%arg0: i32) -> (i32, i32) {
    %c0_i32 = arith.constant 0 : i32
    %c0_i32_0 = arith.constant 0 : i32
    %c0_i32_1 = arith.constant 0 : i32
    return %c0_i32, %c0_i32_0 : i32, i32
  }
  func.func @transform_3(%arg0: i32) -> (i32, i32) {
    %c0_i32 = arith.constant 0 : i32
    %c0_i32_0 = arith.constant 0 : i32
    %c0_i32_1 = arith.constant 0 : i32
    return %c0_i32, %c0_i32_0 : i32, i32
  }
  func.func @transform_4(%arg0: i32) -> (i32, i32) {
    %c0_i32 = arith.constant 0 : i32
    %c0_i32_0 = arith.constant 0 : i32
    %c0_i32_1 = arith.constant 0 : i32
    return %c0_i32, %c0_i32_0 : i32, i32
  }
  func.func @transform_5(%arg0: i32) -> (i32, i32) {
    %c0_i32 = arith.constant 0 : i32
    %c0_i32_0 = arith.constant 0 : i32
    return %c0_i32, %arg0 : i32, i32
  }
}

</mosaic_0001>

<bundles_post_ra>
// kernel: rotsnet_forward.1
= control target key start
LH: loop header
LB: loop body
LE: loop exit
PB: predicated region body
PF: predicated region fallthrough
CT: control target
= control target key end

     0   :  { %v21_v0 = vlaneseq  ;;  %v992_v2 = vmov 0   ;;  %v993_v43 = vmov 683565275   ;;  %v994_v45 = vmov 2475754826   ;;  %s1315_s0 = inlined_call_operand.vmem [shape: f32[1,128], index: 0, kind: input, shape index: {}]   ;;  %s1316_s4 = inlined_call_operand.vmem [shape: f32[72,1], index: 4, kind: input, shape index: {}]   ;;  %s1317_s1 = inlined_call_operand.vmem [shape: f32[64,16], index: 1, kind: input, shape index: {}]   ;;  %s1318_s2 = inlined_call_operand.vmem [shape: f32[32,32], index: 2, kind: input, shape index: {}]   ;;  %s1319_s3 = inlined_call_operand.vmem [shape: f32[8,32], index: 3, kind: input, shape index: {}]   ;;  %s1320_s5 = inlined_call_operand.vmem [shape: f32[4,128], index: 5, kind: output, shape index: {}]  }
   0x1   :  { %979 = vset.pattern.permute.xlu1 %v992_v2  ;;  %978 = vset.pattern.permute.xlu0 %v992_v2  ;;  %v1045_v10 = vld [vmem:[%s1315_s0] ss:$0 sm:$0xff]  ;;  %v995_v47 = vmov 2131351028   ;;  %v996_v49 = vmov 2102212464  }
   0x2   :  { %v1029_v1 = vshrl.u32 %v21_v0, 7  ;;  %980 = vset.pattern.permute.xlu2 %v992_v2  ;;  %v997_v51 = vmov 920167782   ;;  %v998_v61 = vmov 1326507024  }
   0x4   :  { %v1034_v3 = vadd.s32 8, %v1029_v1  ;;  %v24_v4 = vcvt.s32.f32 %v1029_v1  ;;  %vm26_vm0 = vcmp.le.s32.totalorder %v1029_v1, 4 }
   0x6   :  { %v25_v5 = vcvt.s32.f32 %v1034_v3  ;;  %v935_v6 = vadd.f32 -1.0, %v24_v4  ;;  %v937_v7 = vadd.f32 -5.0, %v24_v4 }
   0x8   :  { %v938_v8 = vadd.f32 -5.0, %v25_v5  ;;  %v32_v9 = vsel %vm26_vm0, %v935_v6, %v937_v7 }
   0x9   :  { %982 = vpow2.f32 %v32_v9 }
   0xa   :  { %984 = vpow2.f32 %v938_v8 }
   0xf   :  { %v983_v11 = vpop.eup %982 }
  0x10   :  { %v985_v12 = vpop.eup %984  ;;  %v36_v13 = vmul.f32 3.1415927, %v983_v11 }
  0x11   :  { %v37_v14 = vmul.f32 3.1415927, %v985_v12 }
  0x12   :  { %v1048_v15 = vmul.f32 %v1045_v10, %v36_v13 }
  0x13   :  { %v1051_v16 = vmul.f32 %v1045_v10, %v37_v14 }
  0x14   :  { %v45_v17 = vand.u32 2147483647, %v1048_v15  ;;  %v48_v18 = vand.u32 2139095040, %v1048_v15 }
  0x15   :  { %v511_v19 = vand.u32 2147483647, %v1051_v16  ;;  %v514_v20 = vand.u32 2139095040, %v1051_v16 }
  0x16   :  { %v49_v21 = vshrl.u32 %v48_v18, 23  ;;  %v52_v22 = vand.u32 8388607, %v45_v17 }
  0x17   :  { %v515_v23 = vshrl.u32 %v514_v20, 23  ;;  %v518_v24 = vand.u32 8388607, %v511_v19 }
  0x18   :  { %v939_v25 = vadd.s32 4294967169, %v49_v21  ;;  %v53_v26 = vor.u32 8388608, %v52_v22 }
  0x19   :  { %v948_v27 = vadd.s32 4294967169, %v515_v23  ;;  %v519_v28 = vor.u32 8388608, %v518_v24 }
  0x1a   :  { %v55_v29 = vadd.s32 1, %v939_v25  ;;  %v1061_v31 = vshll.u32 %v53_v26, 8 }
  0x1b   :  { %v521_v30 = vadd.s32 1, %v948_v27  ;;  %v1063_v32 = vshll.u32 %v519_v28, 8 }
  0x1c   :  { %vm56_vm1 = vcmp.gt.s32.totalorder %v55_v29, 0  ;;  %v1068_v37 = vand.u32 65535, %v1061_v31  ;;  %v1077_v41 = vshrl.u32 %v1061_v31, 16 }
  0x1d   :  { %vm522_vm2 = vcmp.gt.s32.totalorder %v521_v30, 0  ;;  %v57_v33 = vsel %vm56_vm1, %v55_v29, 0  ;;  %v560_v39 = vand.u32 65535, %v1063_v32  ;;  %v1074_v40 = vshrl.u32 %v1063_v32, 16 }
  0x1e   :  { %v523_v34 = vsel %vm522_vm2, %v521_v30, 0  ;;  %v1065_v35 = vand.u32 31, %v57_v33  ;;  %v1100_v23 = vshrl.u32 %v57_v33, 5 }
  0x1f   :  { %v525_v36 = vand.u32 31, %v523_v34  ;;  %v1070_v38 = vshrl.u32 %v523_v34, 5 }
  0x20   :  { %v1081_v53 = vsub.s32 32, %v1065_v35  ;;  %v62_v54 = vshll.u32 %v993_v43, %v1065_v35  ;;  %v65_v58 = vshll.u32 %v994_v45, %v1065_v35  ;;  %v68_v7 = vshll.u32 %v995_v47, %v1065_v35 }
  0x21   :  { %v526_v42 = vsub.s32 32, %v525_v36  ;;  %v528_v44 = vshll.u32 %v993_v43, %v525_v36  ;;  %v531_v46 = vshll.u32 %v994_v45, %v525_v36  ;;  %v534_v48 = vshll.u32 %v995_v47, %v525_v36 }
  0x22   :  { %v537_v50 = vshll.u32 %v996_v49, %v525_v36  ;;  %v540_v52 = vshll.u32 %v997_v51, %v525_v36  ;;  %vm543_vm3 = vcmp.lt.s32.totalorder %v1070_v38, 1  ;;  %vm546_vm4 = vcmp.lt.s32.totalorder %v1070_v38, 4 }
  0x23   :  { %v529_v55 = vshrl.u32 %v994_v45, %v526_v42  ;;  %v532_v56 = vshrl.u32 %v995_v47, %v526_v42  ;;  %v535_v57 = vshrl.u32 %v996_v49, %v526_v42  ;;  %v527_v59 = vshrl.u32 %v993_v43, %v526_v42 }
  0x24   :  { %v538_v60 = vshrl.u32 %v997_v51, %v526_v42  ;;  %v541_v62 = vshrl.u32 %v998_v61, %v526_v42  ;;  %vm545_vm5 = vcmp.lt.s32.totalorder %v1070_v38, 3  ;;  %vm544_vm6 = vcmp.lt.s32.totalorder %v1070_v38, 2 }
  0x25   :  { %v530_v63 = vor.u32 %v529_v55, %v528_v44  ;;  %v533_v0 = vor.u32 %v532_v56, %v531_v46  ;;  %v536_v4 = vor.u32 %v535_v57, %v534_v48  ;;  %v63_v14 = vshrl.u32 %v994_v45, %v1081_v53 }
  0x26   :  { %v539_v5 = vor.u32 %v538_v60, %v537_v50  ;;  %v542_v6 = vor.u32 %v541_v62, %v540_v52  ;;  %v66_v18 = vshrl.u32 %v995_v47, %v1081_v53  ;;  %v69_v27 = vshrl.u32 %v996_v49, %v1081_v53 }
  0x27   :  { %v548_v8 = vsel %vm546_vm4, %v536_v4, 2102212464  ;;  %v551_v9 = vsel %vm543_vm3, %v530_v63, %v533_v0  ;;  %v555_v11 = vsel %vm543_vm3, %v533_v0, %v536_v4  ;;  %v547_v20 = vsel %vm543_vm3, %v527_v59, %v530_v63 }
  0x28   :  { %v552_v12 = vsel %vm546_vm4, %v539_v5, 920167782  ;;  %v556_v13 = vsel %vm546_vm4, %v542_v6, 1326507024  ;;  %v549_v24 = vsel %vm545_vm5, %v533_v0, %v548_v8  ;;  %v1107_v36 = vor.u32 %v63_v14, %v62_v54 }
  0x29   :  { %v553_v21 = vsel %vm545_vm5, %v536_v4, %v552_v12  ;;  %v557_v22 = vsel %vm545_vm5, %v539_v5, %v556_v13  ;;  %v1109_v42 = vor.u32 %v66_v18, %v65_v58  ;;  %v1111_v44 = vor.u32 %v69_v27, %v68_v7 }
  0x2a   :  { %v554_v25 = vsel %vm544_vm6, %v551_v9, %v553_v21  ;;  %v558_v26 = vsel %vm544_vm6, %v555_v11, %v557_v22  ;;  %v71_v33 = vshll.u32 %v996_v49, %v1065_v35  ;;  %v72_v48 = vshrl.u32 %v997_v51, %v1081_v53 }
  0x2b   :  { %v562_v28 = vand.u32 65535, %v558_v26  ;;  %v563_v29 = vshrl.u32 %v558_v26, 16  ;;  %v584_v30 = vand.u32 65535, %v554_v25  ;;  %v585_v34 = vshrl.u32 %v554_v25, 16 }
  0x2c   :  { %v74_v56 = vshll.u32 %v997_v51, %v1065_v35  ;;  %v75_v5 = vshrl.u32 %v998_v61, %v1081_v53  ;;  %v73_v35 = vor.u32 %v72_v48, %v71_v33  ;;  %vm77_vm10 = vcmp.lt.s32.totalorder %v1100_v23, 1 }
  0x2d   :  { %v564_v45 = vmul.u32 %v562_v28, %v560_v39  ;;  %v565_v46 = vmul.u32 %v563_v29, %v560_v39  ;;  %v566_v47 = vmul.u32 %v562_v28, %v1074_v40  ;;  %v586_v50 = vmul.u32 %v584_v30, %v560_v39 }
  0x2e   :  { %v587_v52 = vmul.u32 %v585_v34, %v560_v39  ;;  %v588_v55 = vmul.u32 %v584_v30, %v1074_v40  ;;  %v567_v54 = vmul.u32 %v563_v29, %v1074_v40  ;;  %v589_v59 = vmul.u32 %v585_v34, %v1074_v40 }
  0x2f   :  { %v568_v57 = vshll.u32 %v565_v46, 16  ;;  %v570_v58 = vshll.u32 %v566_v47, 16  ;;  %v569_v60 = vshrl.u32 %v565_v46, 16  ;;  %v571_v49 = vshrl.u32 %v566_v47, 16 }
  0x30   :  { %v590_v62 = vshll.u32 %v587_v52, 16  ;;  %v592_v63 = vshll.u32 %v588_v55, 16  ;;  %v591_v4 = vshrl.u32 %v587_v52, 16  ;;  %v76_v9 = vor.u32 %v75_v5, %v74_v56 }
  0x31   :  { %vm572_vm7 = vc.u32 %v564_v45, %v568_v57  ;;  %v574_v0 = vadd.s32 %v568_v57, %v564_v45  ;;  %v593_v12 = vshrl.u32 %v588_v55, 16  ;;  %vm79_vm12 = vcmp.lt.s32.totalorder %v1100_v23, 3 }
  0x32   :  { %v573_v39 = vsel %vm572_vm7, 1, %v992_v2  ;;  %vm594_vm8 = vc.u32 %v586_v50, %v590_v62  ;;  %v596_v6 = vadd.s32 %v590_v62, %v586_v50  ;;  %vm78_vm13 = vcmp.lt.s32.totalorder %v1100_v23, 2 }
  0x33   :  { %v575_v51 = vadd.s32 %v573_v39, %v567_v54  ;;  %vm576_vm9 = vc.u32 %v574_v0, %v570_v58  ;;  %v595_v7 = vsel %vm594_vm8, 1, %v992_v2  ;;  %vm80_vm14 = vcmp.lt.s32.totalorder %v1100_v23, 4 }
  0x34   :  { %v577_v40 = vsel %vm576_vm9, 1, %v992_v2  ;;  %v597_v8 = vadd.s32 %v595_v7, %v589_v59  ;;  %vm598_vm11 = vc.u32 %v596_v6, %v592_v63  ;;  %v85_v14 = vsel %vm77_vm10, %v1107_v36, %v1109_v42 }
  0x35   :  { %v579_v11 = vadd.s32 %v577_v40, %v575_v51  ;;  %v599_v61 = vsel %vm598_vm11, 1, %v992_v2  ;;  %v1133_v21 = vadd.s32 %v596_v6, %v592_v63  ;;  %v86_v22 = vsel %vm80_vm14, %v73_v35, 920167782 }
  0x36   :  { %v601_v13 = vadd.s32 %v599_v61, %v597_v8  ;;  %v89_v25 = vsel %vm77_vm10, %v1109_v42, %v1111_v44  ;;  %v550_v26 = vsel %vm544_vm6, %v547_v20, %v549_v24  ;;  %v87_v28 = vsel %vm79_vm12, %v1111_v44, %v86_v22 }
  0x37   :  { %v580_v18 = vadd.s32 %v579_v11, %v569_v60  ;;  %v90_v29 = vsel %vm80_vm14, %v76_v9, 1326507024  ;;  %v88_v34 = vsel %vm78_vm13, %v85_v14, %v87_v28  ;;  %v604_v46 = vmul.u32 %v1063_v32, %v550_v26 }
  0x38   :  { %v602_v27 = vadd.s32 %v601_v13, %v591_v4  ;;  %v91_v33 = vsel %vm79_vm12, %v73_v35, %v90_v29  ;;  %v118_v20 = vand.u32 65535, %v88_v34  ;;  %v119_v24 = vshrl.u32 %v88_v34, 16 }
  0x39   :  { %v1148_v30 = vadd.s32 %v580_v18, %v571_v49  ;;  %v92_v38 = vsel %vm78_vm13, %v89_v25, %v91_v33  ;;  %v61_v52 = vshrl.u32 %v993_v43, %v1081_v53  ;;  %v82_v59 = vsel %vm80_vm14, %v1111_v44, 2102212464 }
  0x3a   :  { %v603_v45 = vadd.s32 %v602_v27, %v593_v12  ;;  %v96_v47 = vand.u32 65535, %v92_v38  ;;  %v97_v48 = vshrl.u32 %v92_v38, 16  ;;  %v121_v55 = vmul.u32 %v119_v24, %v1068_v37 }
  0x3b   :  { %vm606_vm15 = vc.u32 %v1148_v30, %v1133_v21  ;;  %v122_v56 = vmul.u32 %v118_v20, %v1077_v41  ;;  %v120_v60 = vmul.u32 %v118_v20, %v1068_v37  ;;  %v81_v63 = vsel %vm77_vm10, %v61_v52, %v1107_v36 }
  0x3c   :  { %v607_v50 = vadd.s32 1, %v603_v45  ;;  %v98_v54 = vmul.u32 %v96_v47, %v1068_v37  ;;  %v99_v57 = vmul.u32 %v97_v48, %v1068_v37  ;;  %v100_v58 = vmul.u32 %v96_v47, %v1077_v41 }
  0x3d   :  { %v124_v49 = vshll.u32 %v121_v55, 16  ;;  %v101_v43 = vmul.u32 %v97_v48, %v1077_v41  ;;  %v123_v4 = vmul.u32 %v119_v24, %v1077_v41  ;;  %v126_v5 = vshll.u32 %v122_v56, 16 }
  0x3e   :  { %v608_v32 = vsel %vm606_vm15, %v607_v50, %v603_v45  ;;  %v102_v53 = vshll.u32 %v99_v57, 16  ;;  %v104_v0 = vshll.u32 %v100_v58, 16  ;;  %v83_v44 = vsel %vm79_vm12, %v1109_v42, %v82_v59 }
  0x3f   :  { %v609_v62 = vadd.s32 %v608_v32, %v604_v46  ;;  %v103_v6 = vshrl.u32 %v99_v57, 16  ;;  %vm128_vm2 = vc.u32 %v120_v60, %v124_v49  ;;  %v130_v51 = vadd.s32 %v124_v49, %v120_v60 }
  0x40   :  { %vm106_vm1 = vc.u32 %v98_v54, %v102_v53  ;;  %v108_v37 = vadd.s32 %v102_v53, %v98_v54  ;;  %v129_v36 = vsel %vm128_vm2, 1, %v992_v2  ;;  %v125_v8 = vshrl.u32 %v121_v55, 16 }
  0x41   :  { %v610_v39 = vadd.s32 536870912, %v609_v62  ;;  %v107_v35 = vsel %vm106_vm1, 1, %v992_v2  ;;  %v131_v9 = vadd.s32 %v129_v36, %v123_v4  ;;  %vm132_vm4 = vc.u32 %v130_v51, %v126_v5 }
  0x42   :  { %v109_v40 = vadd.s32 %v107_v35, %v101_v43  ;;  %vm110_vm3 = vc.u32 %v108_v37, %v104_v0  ;;  %v105_v11 = vshrl.u32 %v100_v58, 16  ;;  %v133_v61 = vsel %vm132_vm4, 1, %v992_v2 }
  0x43   :  { %v1179_v7 = vshrl.u32 %v610_v39, 30  ;;  %v111_v41 = vsel %vm110_vm3, 1, %v992_v2  ;;  %v127_v13 = vshrl.u32 %v122_v56, 16  ;;  %v135_v14 = vadd.s32 %v133_v61, %v131_v9 }
  0x44   :  { %v113_v12 = vadd.s32 %v111_v41, %v109_v40  ;;  %v134_v25 = vadd.s32 %v130_v51, %v126_v5  ;;  %v84_v26 = vsel %vm78_vm13, %v81_v63, %v83_v44  ;;  %v605_v47 = vadd.s32 %v1133_v21, %v1148_v30 }
  0x45   :  { %v612_v42 = vshll.u32 %v1179_v7, 30  ;;  %v136_v27 = vadd.s32 %v135_v14, %v125_v8  ;;  %v138_v45 = vmul.u32 %v1061_v31, %v84_v26  ;;  %vm513_vm9 = vcmp.lt.s32.totalorder %v1051_v16, 0 }
  0x46   :  { %v114_v22 = vadd.s32 %v113_v12, %v103_v6  ;;  %vm1196_vm10 = vcmp.le.f32.partialorder %v511_v19, 0.7853982  ;;  %v635_v5 = vsub.s32 4, %v1179_v7  ;;  %vm47_vm12 = vcmp.lt.s32.totalorder %v1048_v15, 0 }
  0x47   :  { %v613_v18 = vsub.s32 %v609_v62, %v612_v42  ;;  %v137_v34 = vadd.s32 %v136_v27, %v127_v13  ;;  %vm1214_vm13 = vcmp.le.f32.partialorder %v45_v17, 0.7853982  ;;  %v671_v17 = vld [vmem:[%s1316_s4] sm:$0xff]  ;;  %vm356_vm2 = vcmp.le.s32.totalorder %v1034_v3, 8 }
  0x48   :  { %v115_v29 = vadd.s32 %v114_v22, %v105_v11  ;;  %v636_v19 = vsel %vm513_vm9, %v635_v5, %v1179_v7  ;;  %v672_v7 = vld [vmem:[%s1316_s4 + $0x8] sm:$0xff]  ;;  %vm654_vm3 = vweird.f32 %v1051_v16 }
  0x49   :  { %vm614_vm5 = vcmp.lt.s32.totalorder %v613_v18, 0  ;;  %v615_v28 = vsub.s32 0, %v613_v18  ;;  %v141_v20 = vadd.s32 1, %v137_v34  ;;  %v638_v14 = vsel %vm1196_vm10, 0, %v636_v19  ;;  %761 = vperm.xlu1 %979, %v672_v7  }
  0x4a   :  { %vm140_vm6 = vc.u32 %v115_v29, %v134_v25  ;;  %v139_v44 = vadd.s32 %v134_v25, %v115_v29 }
  0x4b   :  { %v616_v33 = vsel %vm614_vm5, %v615_v28, %v613_v18  ;;  %v142_v24 = vsel %vm140_vm6, %v141_v20, %v137_v34  ;;  %v655_v34 = vand.u32 3, %v638_v14 }
  0x4c   :  { %v617_v38 = vclz %v616_v33  ;;  %v143_v46 = vadd.s32 %v142_v24, %v138_v45 }
  0x4d   :  { %vm660_vm14 = vcmp.eq.s32.totalorder %v655_v34, 2  ;;  %vm657_vm15 = vcmp.eq.s32.totalorder %v655_v34, 0  ;;  %vm656_vm1 = vcmp.lt.s32.totalorder %v655_v34, 2  ;;  %v687_v34 = vld [vmem:[%s1317_s1 + $0x38] sm:$0xff] }
  0x4e   :  { %v949_v2 = vadd.s32 4294967294, %v617_v38  ;;  %v144_v48 = vadd.s32 536870912, %v143_v46 }
  0x50   :  { %vm950_vm7 = vcmp.lt.s32.totalorder %v949_v2, 0  ;;  %v1190_v56 = vshrl.u32 %v144_v48, 30 }
  0x51   :  { %v620_v23 = vsel %vm950_vm7, 0, %v949_v2  ;;  %756 = vperm.xlu1 %979, %v671_v17   ;;  %v782_v17 = vld [vmem:[%s1318_s2] sm:$0xff] }
  0x52   :  { %v621_v50 = vsub.s32 32, %v620_v23  ;;  %v622_v52 = vshll.u32 %v613_v18, %v620_v23  ;;  %v625_v55 = vsub.s32 4294967266, %v620_v23  ;;  %v146_v31 = vshll.u32 %v1190_v56, 30 }
  0x53   :  { %v169_v20 = vsub.s32 4, %v1190_v56 }
  0x54   :  { %v623_v54 = vshrl.u32 %v605_v47, %v621_v50  ;;  %v626_v57 = vadd.s32 127, %v625_v55  ;;  %v147_v59 = vsub.s32 %v143_v46, %v146_v31 }
  0x56   :  { %v624_v58 = vor.u32 %v623_v54, %v622_v52  ;;  %v627_v32 = vshll.u32 %v626_v57, 23  ;;  %vm148_vm8 = vcmp.lt.s32.totalorder %v147_v59, 0  ;;  %v149_v62 = vsub.s32 0, %v147_v59 }
  0x57   :  { %v170_v52 = vsel %vm47_vm12, %v169_v20, %v1190_v56  ;;  %v678_v20 = vld [vmem:[%s1316_s4 + $0x38] sm:$0xff] }
  0x58   :  { %v628_v60 = vor.u32 4788187, %v627_v32  ;;  %v631_v49 = vcvt.s32.f32 %v624_v58  ;;  %v150_v30 = vsel %vm148_vm8, %v149_v62, %v147_v59  ;;  %v674_v58 = vld [vmem:[%s1316_s4 + $0x18] sm:$0xff]  ;;  %v172_v32 = vsel %vm1214_vm13, 0, %v170_v52  ;;  %845 = vperm.xlu2 %980, %v678_v20   ;;  %v677_v52 = vld [vmem:[%s1316_s4 + $0x30] sm:$0xff] }
  0x59   :  { %v151_v53 = vclz %v150_v30  ;;  %771 = vperm.xlu0 %978, %v674_v58   ;;  %v501_v5 = vand.u32 3, %v172_v32  ;;  %v785_v58 = vld [vmem:[%s1318_s2 + $0x18] sm:$0xff] }
  0x5a   :  { %v629_v21 = vand.u32 2147483647, %v628_v60 }
  0x5b   :  { %v940_v4 = vadd.s32 4294967294, %v151_v53  ;;  %vm506_vm5 = vcmp.eq.s32.totalorder %v501_v5, 2  ;;  %vm503_vm8 = vcmp.eq.s32.totalorder %v501_v5, 0 }
  0x5c   :  { %v632_v43 = vmul.f32 %v631_v49, %v629_v21 }
  0x5d   :  { %vm941_vm11 = vcmp.lt.s32.totalorder %v940_v4, 0 }
  0x5e   :  { %v633_v0 = vxor.u32 2147483648, %v632_v43  ;;  %v154_v6 = vsel %vm941_vm11, 0, %v940_v4  ;;  %vm43_vm11 = vcmp.eq.s32.totalorder %v1029_v1, 0 }
  0x5f   :  { %v155_v51 = vsub.s32 32, %v154_v6  ;;  %v156_v40 = vshll.u32 %v147_v59, %v154_v6  ;;  %v159_v36 = vsub.s32 4294967266, %v154_v6 }
  0x60   :  { %v634_v39 = vsel %vm513_vm9, %v633_v0, %v632_v43  ;;  %v189_v43 = vadd.s32 3, %v172_v32  ;;  %vm502_vm9 = vcmp.lt.s32.totalorder %v501_v5, 2  ;;  %840 = vperm.xlu2 %980, %v677_v52   ;;  %v783_v32 = vld [vmem:[%s1318_s2 + $0x8] sm:$0xff] }
  0x61   :  { %v637_v37 = vsel %vm1196_vm10, %v1051_v16, %v634_v39  ;;  %v157_v9 = vshrl.u32 %v139_v44, %v155_v51  ;;  %v160_v42 = vadd.s32 127, %v159_v36  ;;  %v673_v16 = vld [vmem:[%s1316_s4 + $0x10] sm:$0xff]  ;;  %vm188_vm10 = vweird.f32 %v1048_v15 }
  0x62   :  { %v639_v35 = vmul.f32 %v637_v37, %v637_v37  ;;  %v190_v4 = vand.u32 3, %v189_v43  ;;  %766 = vperm.xlu0 %978, %v673_v16  }
  0x63   :  { %v158_v61 = vor.u32 %v157_v9, %v156_v40  ;;  %v161_v13 = vshll.u32 %v160_v42, 23 }
  0x64   :  { %v640_v41 = vmul.f32 -0.001358992, %v639_v35  ;;  %v647_v8 = vmul.f32 -0.00019511016, %v639_v35  ;;  %vm195_vm4 = vcmp.eq.s32.totalorder %v190_v4, 2  ;;  %vm191_vm6 = vcmp.lt.s32.totalorder %v190_v4, 2 }
  0x65   :  { %v162_v25 = vor.u32 4788187, %v161_v13  ;;  %v165_v26 = vcvt.s32.f32 %v158_v61  ;;  %vm192_vm7 = vcmp.eq.s32.totalorder %v190_v4, 0 }
  0x66   :  { %v641_v11 = vadd.f32 0.041655596, %v640_v41  ;;  %v648_v12 = vadd.f32 0.008332121, %v647_v8  ;;  %v676_v41 = vld [vmem:[%s1316_s4 + $0x28] sm:$0xff]  ;;  %v675_v8 = vld [vmem:[%s1316_s4 + $0x20] sm:$0xff] }
  0x67   :  { %v163_v29 = vand.u32 2147483647, %v162_v25  ;;  %830 = vperm.xlu1 %979, %v675_v8   ;;  %v682_v25 = vld [vmem:[%s1317_s1 + $0x10] sm:$0xff] }
  0x68   :  { %v642_v18 = vmul.f32 %v641_v11, %v639_v35  ;;  %v649_v22 = vmul.f32 %v648_v12, %v639_v35 }
  0x69   :  { %v166_v38 = vmul.f32 %v165_v26, %v163_v29  ;;  %v684_v26 = vld [vmem:[%s1317_s1 + $0x20] sm:$0xff] }
  0x6a   :  { %v643_v27 = vadd.f32 -0.4999988, %v642_v18  ;;  %v650_v28 = vadd.f32 -0.16666654, %v649_v22  ;;  %835 = vperm.xlu0 %978, %v676_v41   ;;  %v680_v18 = vld [vmem:[%s1317_s1] sm:$0xff]  ;;  %v681_v22 = vld [vmem:[%s1317_s1 + $0x8] sm:$0xff] }
  0x6b   :  { %v167_v47 = vxor.u32 2147483648, %v166_v38 }
  0x6c   :  { %v644_v33 = vmul.f32 %v643_v27, %v639_v35  ;;  %v651_v45 = vmul.f32 %v650_v28, %v639_v35  ;;  %v685_v27 = vld [vmem:[%s1317_s1 + $0x28] sm:$0xff]  ;;  %v686_v28 = vld [vmem:[%s1317_s1 + $0x30] sm:$0xff] }
  0x6d   :  { %v168_v50 = vsel %vm47_vm12, %v167_v47, %v166_v38  ;;  %vm688_vm12 = vcmask 130048  }
  0x6e   :  { %v645_v2 = vadd.f32 1.0, %v644_v33  ;;  %v652_v24 = vadd.f32 1.0, %v651_v45  ;;  %v171_v55 = vsel %vm1214_vm13, %v1048_v15, %v168_v50 }
  0x6f   :  { %v173_v31 = vmul.f32 %v171_v55, %v171_v55 }
  0x70   :  { %v653_v23 = vmul.f32 %v652_v24, %v637_v37  ;;  %v661_v48 = vxor.u32 2147483648, %v645_v2 }
  0x71   :  { %v174_v59 = vmul.f32 -0.001358992, %v173_v31  ;;  %v181_v60 = vmul.f32 -0.00019511016, %v173_v31 }
  0x72   :  { %v658_v54 = vxor.u32 2147483648, %v653_v23  ;;  %v662_v57 = vsel %vm660_vm14, %v661_v48, %v653_v23 }
  0x73   :  { %v175_v21 = vadd.f32 0.041655596, %v174_v59  ;;  %v182_v30 = vadd.f32 0.008332121, %v181_v60  ;;  %v784_v59 = vld [vmem:[%s1318_s2 + $0x10] sm:$0xff] }
  0x74   :  { %v659_v56 = vsel %vm657_vm15, %v645_v2, %v658_v54 }
  0x75   :  { %v663_v49 = vsel %vm656_vm1, %v659_v56, %v662_v57  ;;  %v176_v53 = vmul.f32 %v175_v21, %v173_v31  ;;  %v183_v63 = vmul.f32 %v182_v30, %v173_v31  ;;  %v679_v56 = vld [vmem:[%s1316_s4 + $0x40] sm:$0xff] }
  0x76   :  { %v664_v62 = vsel %vm654_vm3, nan, %v663_v49  ;;  %882 = vperm.xlu2 %980, %v679_v56  }
  0x77   :  { %951 = vmatpush.msk.msra.mxu0 %vm356_vm2, %v664_v62  ;;  %965 = vmatpush.msk.msra.mxu3 %vm356_vm2, %v664_v62  ;;  %v177_v3 = vadd.f32 -0.4999988, %v176_v53  ;;  %v184_v0 = vadd.f32 -0.16666654, %v183_v63 }
  0x79   :  { %v178_v39 = vmul.f32 %v177_v3, %v173_v31  ;;  %v185_v44 = vmul.f32 %v184_v0, %v173_v31 }
  0x7b   :  { %v179_v37 = vadd.f32 1.0, %v178_v39  ;;  %v186_v6 = vadd.f32 1.0, %v185_v44 }
  0x7d   :  { %v187_v35 = vmul.f32 %v186_v6, %v171_v55  ;;  %v196_v51 = vxor.u32 2147483648, %v179_v37 }
  0x7f   :  { %v193_v40 = vxor.u32 2147483648, %v187_v35  ;;  %v197_v36 = vsel %vm195_vm4, %v196_v51, %v187_v35  ;;  %v508_v19 = vsel %vm506_vm5, %v196_v51, %v187_v35 }
  0x81   :  { %v194_v9 = vsel %vm192_vm7, %v179_v37, %v193_v40  ;;  %v505_v42 = vsel %vm503_vm8, %v179_v37, %v193_v40 }
  0x82   :  { %v198_v11 = vsel %vm191_vm6, %v194_v9, %v197_v36  ;;  %v509_v12 = vsel %vm502_vm9, %v505_v42, %v508_v19  ;;  %v856_v9 = vld [vmem:[%s1319_s3] sm:$0xff] }
  0x83   :  { %v199_v61 = vsel %vm188_vm10, nan, %v198_v11  ;;  %v510_v13 = vsel %vm188_vm10, nan, %v509_v12 }
  0x84   :  { %v667_v14 = vsel %vm26_vm0, %v199_v61, %v510_v13  ;;  %vm786_vm0 = vcmask 261120  }
  0x85   :  { %v669_v15 = vsel %vm43_vm11, %v1045_v10, %v667_v14  ;;  %v683_v10 = vld [vmem:[%s1317_s1 + $0x18] sm:$0xff] }
  0x86   :  { %728 = vmatpush.msra.mxu0 %v669_v15  ;;  %966 = vmatpush.msra.mxu3 %v669_v15 }
  0x87   :  { %952 = vmatmul.msk.f32.vlgmr.msra.gmra.mxu0 %vm688_vm12, %v680_v18  ;;  %956 = vmatmul.msk.f32.vlgmr.msra.gmra.mxu3 %vm688_vm12, %v684_v26 }
  0x8f   :  { %953 = vmatmul.msk.f32.gmra.mxu0 %vm688_vm12, %v681_v22  ;;  %957 = vmatmul.msk.f32.gmra.mxu3 %vm688_vm12, %v685_v27 }
  0x97   :  { %954 = vmatmul.msk.f32.gmra.mxu0 %vm688_vm12, %v682_v25  ;;  %958 = vmatmul.msk.f32.gmra.mxu3 %vm688_vm12, %v686_v28 }
  0x9f   :  { %955 = vmatmul.msk.f32.gmra.mxu0 %vm688_vm12, %v683_v10  ;;  %959 = vmatmul.msk.f32.gmra.mxu3 %vm688_vm12, %v687_v34 }
  0xb2   :  { %v846_v63 = vpop.permute.xlu2 %845 }
  0xba   :  { %v841_v6 = vpop.permute.xlu2 %840 }
  0xbb   :  { %v762_v45 = vpop.permute.xlu1 %761 }
  0xc3   :  { %v757_v23 = vpop.permute.xlu1 %756 }
  0xcb   :  { %v772_v33 = vpop.permute.xlu0 %771 }
  0xd0   :  { %v883_v42 = vpop.permute.xlu2 %882 }
  0xd4   :  { %v767_v2 = vpop.permute.xlu0 %766 }
  0xd9   :  { %v831_v40 = vpop.permute.xlu1 %830 }
  0xdc   :  { %v836_v37 = vpop.permute.xlu0 %835 }
 0x104   :  { %v730_v29 = vpop.f32.mrf.mxu0 }
 0x105   :  { %v774_v55 = vadd.f32 %v757_v23, %v730_v29 }
 0x107   :  { %v778_v31 = vmax.f32 %v774_v55, 0.0 }
 0x10a   :  { %v742_v60 = vpop.f32.mrf.mxu3 }
 0x10c   :  { %v733_v7 = vpop.f32.mrf.mxu0 }
 0x10d   :  { %v775_v48 = vadd.f32 %v762_v45, %v733_v7 }
 0x10f   :  { %v779_v57 = vmax.f32 %v775_v48, 0.0 }
 0x112   :  { %v745_v49 = vpop.f32.mrf.mxu3 }
 0x114   :  { %v736_v38 = vpop.f32.mrf.mxu0 }
 0x115   :  { %v776_v46 = vadd.f32 %v767_v2, %v736_v38 }
 0x117   :  { %v780_v54 = vmax.f32 %v776_v46, 0.0 }
 0x11a   :  { %v748_v62 = vpop.f32.mrf.mxu3 }
 0x11c   :  { %v739_v24 = vpop.f32.mrf.mxu0 }
 0x11d   :  { %v777_v47 = vadd.f32 %v772_v33, %v739_v24 }
 0x11f   :  { %v781_v50 = vmax.f32 %v777_v47, 0.0 }
 0x121   :  { %811 = vmatpush.msra.mxu1 %v781_v50  ;;  %967 = vmatpush.msra.mxu2 %v781_v50 }
 0x122   :  { %v751_v30 = vpop.f32.mrf.mxu3 }
 0x123   :  { %812 = vmatpush.msra.mxu1 %v780_v54  ;;  %968 = vmatpush.msra.mxu2 %v780_v54 }
 0x125   :  { %813 = vmatpush.msra.mxu1 %v779_v57  ;;  %969 = vmatpush.msra.mxu2 %v779_v57 }
 0x127   :  { %814 = vmatpush.msra.mxu1 %v778_v31  ;;  %970 = vmatpush.msra.mxu2 %v778_v31 }
 0x128   :  { %960 = vmatmul.msk.f32.vlgmr.msra.gmra.mxu1 %vm786_vm0, %v782_v17  ;;  %963 = vmatmul.msk.f32.vlgmr.msra.gmra.mxu2 %vm786_vm0, %v785_v58 }
 0x130   :  { %961 = vmatmul.msk.f32.gmra.mxu1 %vm786_vm0, %v783_v32 }
 0x138   :  { %962 = vmatmul.msk.f32.gmra.mxu1 %vm786_vm0, %v784_v59 }
 0x1a5   :  { %v816_v21 = vpop.f32.mrf.mxu1 }
 0x1a6   :  { %v817_v39 = vadd.f32 %v816_v21, %v742_v60 }
 0x1a8   :  { %v848_v19 = vadd.f32 %v831_v40, %v817_v39 }
 0x1aa   :  { %v852_v8 = vmax.f32 %v848_v19, 0.0 }
 0x1ab   :  { %v825_v43 = vpop.f32.mrf.mxu2 }
 0x1ac   :  { %v826_v53 = vadd.f32 %v825_v43, %v751_v30 }
 0x1ad   :  { %v819_v3 = vpop.f32.mrf.mxu1 }
 0x1ae   :  { %v851_v0 = vadd.f32 %v846_v63, %v826_v53  ;;  %v820_v4 = vadd.f32 %v819_v3, %v745_v49 }
 0x1b0   :  { %v855_v16 = vmax.f32 %v851_v0, 0.0  ;;  %v849_v51 = vadd.f32 %v836_v37, %v820_v4 }
 0x1b2   :  { %872 = vmatpush.msrb.mxu2 %v855_v16  ;;  %v853_v41 = vmax.f32 %v849_v51, 0.0 }
 0x1b5   :  { %v822_v5 = vpop.f32.mrf.mxu1 }
 0x1b6   :  { %v823_v44 = vadd.f32 %v822_v5, %v748_v62 }
 0x1b8   :  { %v850_v35 = vadd.f32 %v841_v6, %v823_v44 }
 0x1ba   :  { %v854_v36 = vmax.f32 %v850_v35, 0.0 }
 0x1bc   :  { %873 = vmatpush.msrb.mxu2 %v854_v36 }
 0x1be   :  { %874 = vmatpush.msrb.mxu2 %v853_v41 }
 0x1c0   :  { %875 = vmatpush.msrb.mxu2 %v852_v8 }
 0x1c1   :  { %964 = vmatmul.msk.f32.vlgmr.msrb.gmra.mxu2 %vm786_vm0, %v856_v9 }
 0x244   :  { %v877_v11 = vpop.f32.mrf.mxu2 }
 0x245   :  { %v885_v12 = vadd.f32 %v883_v42, %v877_v11 }
 0x247   :  { %986 = vtanh.f32 %v885_v12 }
 0x24d   :  { %v987_v61 = vpop.eup %986 }
 0x24e   :  { %v887_v13 = vsub.f32 1.0, %v987_v61 }
 0x250   :  { %v888_v14 = vsel %vm43_vm11, %v887_v13, %v987_v61 }
 0x251   :  { %v889_v18 = vmul.f32 %v888_v14, %v888_v14 }
 0x253   :  { %v891_v15 = vrot.slane %v889_v18, 1  ;;  %v894_v25 = vrot.slane %v889_v18, 2  ;;  %v897_v26 = vrot.slane %v889_v18, 3 }
 0x255   :  { %v893_v22 = vadd.f32 %v891_v15, %v889_v18 }
 0x257   :  { %v896_v10 = vadd.f32 %v894_v25, %v893_v22 }
 0x259   :  { %v899_v27 = vadd.f32 %v897_v26, %v896_v10 }
 0x25b   :  { %988 = vrsqrt.f32 %v899_v27  ;;  %vm907_vm13 = vcmp.eq.f32.partialorder %v899_v27, inf  ;;  %v910_v20 = vand.u32 2147483648, %v899_v27  ;;  %vm909_vm14 = vcmp.eq.f32.partialorder %v899_v27, 0.0 }
 0x261   :  { %v989_v28 = vpop.eup %988 }
 0x262   :  { %v901_v29 = vmul.f32 %v989_v28, %v899_v27 }
 0x264   :  { %v902_v34 = vmul.f32 %v989_v28, %v901_v29 }
 0x266   :  { %v903_v7 = vmul.f32 0.5, %v902_v34 }
 0x268   :  { %v904_v33 = vsub.f32 1.5, %v903_v7 }
 0x26a   :  { %v905_v45 = vmul.f32 %v989_v28, %v904_v33 }
 0x26c   :  { %v906_v38 = vmul.f32 %v905_v45, %v899_v27 }
 0x26e   :  { %v908_v2 = vsel %vm907_vm13, %v899_v27, %v906_v38 }
 0x26f   :  { %v911_v1 = vsel %vm909_vm14, %v910_v20, %v908_v2 }
 0x270   :  { %v912_v24 = vadd.f32 1e-18, %v911_v1 }
 0x272   :  { %990 = vrcp.f32 %v912_v24  ;;  %v924_v48 = vand.u32 2147483648, %v912_v24  ;;  %v922_v52 = vand.u32 2147483647, %v912_v24  ;;  %vm918_vm1 = vweird.f32 %v912_v24 }
 0x274   :  { %v925_v54 = vor.u32 1.1754944e-38, %v924_v48  ;;  %vm923_vm3 = vcmp.eq.f32.partialorder %v922_v52, 8.507059e+37 }
 0x278   :  { %v991_v46 = vpop.eup %990 }
 0x279   :  { %v914_v47 = vmul.f32 %v991_v46, %v912_v24  ;;  %vm919_vm15 = vweird.f32 %v991_v46 }
 0x27a   :  { %vm920_vm2 = vmor %vm918_vm1, %vm919_vm15 }
 0x27b   :  { %v915_v23 = vsub.f32 1.0, %v914_v47 }
 0x27d   :  { %v916_v50 = vmul.f32 %v991_v46, %v915_v23 }
 0x27f   :  { %v917_v55 = vadd.f32 %v991_v46, %v916_v50 }
 0x281   :  { %v921_v57 = vsel %vm920_vm2, %v991_v46, %v917_v55 }
 0x282   :  { %v926_v31 = vsel %vm923_vm3, %v925_v54, %v921_v57 }
 0x283   :  { %v928_v17 = vperm.slane %v926_v31, 0 }
 0x285   :  { %v929_v58 = vmul.f32 %v928_v17, %v888_v14 }
 0x287   :  { %930 = vst [vmem:[%s1320_s5] sm:$0xf] %v929_v58 }

</bundles_post_ra>
